<compile_context>
chip_gen: v5e
topology: v5e:2x2
jax: 0.10.0
libtpu: 0.0.40
codegen_flags: <defaults>
</compile_context>

<pallas_src>
import jax
import jax.numpy as jnp
from jax import lax
from jax.experimental import pallas as pl
from jax.experimental.pallas import tpu as pltpu

# ---- tuning knobs (generation-safe: fit v5e/v6e and v7x's 64 MiB/TC VMEM) ----
_VMEM_TABLE_BYTES = 4 * 1024 * 1024      # resident-table fast-path threshold
_OUT_BLOCK_BUDGET = 16 * 1024 * 1024     # budget for the double-buffered out block
_VMEM_LIMIT_BYTES = 32 * 1024 * 1024     # explicit scoped-VMEM cap (raises v5e's 16 MiB default)
_MAX_VMEM_GATHER_ROWS = 128              # static-unroll bound for the VMEM path
_MAX_DMA_GATHER_ROWS = 2048              # descriptor-issue bound for the HBM path


def _vmem_gather_kernel(ids_ref, table_ref, out_ref):
    # ids_ref:   SMEM (T_pad,) int32 -- token ids (scalar-prefetched)
    # table_ref: VMEM (V, Dw)        -- whole table, resident across grid steps
    #                                   (constant index map -> copied in once)
    # out_ref:   VMEM (tile_t, Dw)   -- lane-dense output block
    i = pl.program_id(0)
    tile_t = out_ref.shape[0]
    vocab = table_ref.shape[0]
    base = i * tile_t
    # Static unroll over the tile: the destination row is a compile-time
    # constant, only the table row (the gather index) is dynamic, so each
    # token is one dynamic-sublane vector load + a plain store (pure vld/vst
    # slot work, no DMA descriptors).
    for j in range(tile_t):
        row = ids_ref[base + j]
        row = jnp.minimum(jnp.maximum(row, 0), vocab - 1)   # safety clamp
        out_ref[pl.ds(j, 1), :] = table_ref[pl.ds(row, 1), :]


def _hbm_gather_kernel(ids_ref, table_hbm, out_ref, copy_sem):
    # ids_ref:   SMEM (T_pad,) int32 -- token ids (scalar-prefetched)
    # table_hbm: HBM  (V, Dw)        -- embedding table, never copied wholesale
    # out_ref:   VMEM (tile_t, Dw)   -- row DMAs land straight in the out block
    # copy_sem:  shared DMA semaphore for all row copies of this grid step
    i = pl.program_id(0)
    tile_t = out_ref.shape[0]
    vocab = table_hbm.shape[0]
    base = i * tile_t

    def issue(j, carry):
        row = ids_ref[base + j]
        row = jnp.minimum(jnp.maximum(row, 0), vocab - 1)   # no unchecked HBM offsets
        pltpu.make_async_copy(
            table_hbm.at[pl.ds(row, 1)],
            out_ref.at[pl.ds(j, 1)],
            copy_sem,
        ).start()
        return carry

    # Modest unroll: lets the scheduler co-issue the scalar id load / clamp
    # with the descriptor pushes (the single vector-misc slot is the binding
    # resource for small rows).
    lax.fori_loop(0, tile_t, issue, 0, unroll=8)

    # Single tile-level wait: every row copy signals `copy_sem` with exactly
    # one row's worth of bytes, so waiting for one full (tile_t, Dw) block is
    # exact accounting.  Replaces the old per-row wait loop.
    pltpu.make_async_copy(out_ref, out_ref, copy_sem).wait()


def _to_payload_view(table):
    """View sub-32-bit tables as uint32 rows so each gathered row is a clean
    full-lane-width copy (bf16/int8 rows would otherwise land on packed
    sublanes and degrade into strided/partial writes)."""
    dt = jnp.dtype(table.dtype)
    if dt.itemsize >= 4:
        return table, None
    per_word = 4 // dt.itemsize
    V, D = table.shape
    if D % per_word != 0:
        # Odd trailing dim: fall back to the native-dtype gather (correct,
        # just a less friendly row layout).
        return table, None
    packed = lax.bitcast_convert_type(
        table.reshape(V, D // per_word, per_word), jnp.uint32)
    return packed, (table.dtype, per_word)


def _choose_tile_t(total_tokens, row_bytes, max_rows):
    """Largest power-of-two tile (>=8) such that the double-buffered output
    block stays inside the VMEM budget, capped so the grid keeps >=2 steps
    when there is enough work (lets a v7x megacore split the token axis)."""
    cap = max(8, _OUT_BLOCK_BUDGET // (2 * row_bytes))
    cap = min(cap, max_rows)
    half = -(-total_tokens // 2)
    half = max(8, -(-half // 8) * 8)
    cap = min(cap, half)
    tile = 8
    while tile * 2 <= cap:
        tile *= 2
    return tile


def input_embedding(x, table, *, force_hbm_gather=False):
    """Pallas equivalent of InputEmbedding.forward (nn.Embedding lookup).

    Args:
      x: int array of shape (B, N) with token ids in [0, vocab_len).
      table: (vocab_len, embedding_dim) embedding weight.
      force_hbm_gather: force the large-table DMA-gather path (for testing).

    Returns:
      (B, N, embedding_dim) array of gathered embeddings.
    """
    assert x.ndim == 2, "Input batch should have a shape of (B,N)"
    B, N = x.shape
    V, D = table.shape
    T = B * N

    payload, pack = _to_payload_view(table)
    Vp, Dw = payload.shape
    word_bytes = jnp.dtype(payload.dtype).itemsize
    row_bytes = Dw * word_bytes
    table_bytes = Vp * row_bytes

    use_vmem_table = (not force_hbm_gather) and table_bytes <= _VMEM_TABLE_BYTES
    max_rows = _MAX_VMEM_GATHER_ROWS if use_vmem_table else _MAX_DMA_GATHER_ROWS

    tile_t = _choose_tile_t(T, row_bytes, max_rows)
    num_tiles = pl.cdiv(T, tile_t)
    t_pad = num_tiles * tile_t

    ids = x.reshape(T).astype(jnp.int32)
    if t_pad != T:
        ids = jnp.pad(ids, (0, t_pad - T))   # padded tokens gather row 0; sliced off below

    out_shape = jax.ShapeDtypeStruct((t_pad, Dw), payload.dtype)
    out_spec = pl.BlockSpec((tile_t, Dw), lambda i, ids_ref: (i, 0))
    cparams = pltpu.CompilerParams(
        dimension_semantics=("parallel",),        # token tiles are independent
        vmem_limit_bytes=_VMEM_LIMIT_BYTES)
    cost = pl.CostEstimate(
        flops=0, transcendentals=0,
        bytes_accessed=2 * t_pad * row_bytes + t_pad * 4 + table_bytes)

    if use_vmem_table:
        grid_spec = pltpu.PrefetchScalarGridSpec(
            num_scalar_prefetch=1,                          # ids -> SMEM
            grid=(num_tiles,),
            in_specs=[pl.BlockSpec((Vp, Dw), lambda i, ids_ref: (0, 0))],  # resident table
            out_specs=out_spec,
        )
        kernel = _vmem_gather_kernel
    else:
        grid_spec = pltpu.PrefetchScalarGridSpec(
            num_scalar_prefetch=1,                          # ids -> SMEM
            grid=(num_tiles,),
            in_specs=[pl.BlockSpec(memory_space=pl.ANY)],   # table stays in HBM
            out_specs=out_spec,
            scratch_shapes=[pltpu.SemaphoreType.DMA(())],
        )
        kernel = _hbm_gather_kernel

    out_pad = pl.pallas_call(
        kernel,
        out_shape=out_shape,
        grid_spec=grid_spec,
        compiler_params=cparams,
        cost_estimate=cost,
    )(ids, payload)

    out_flat = out_pad[:T]
    if pack is not None:
        orig_dtype, _ = pack
        out_flat = lax.bitcast_convert_type(out_flat, orig_dtype).reshape(T, D)
    return out_flat.reshape(B, N, D)


if __name__ == "__main__":
    # Small shapes consistent with the module defaults: vocab_len=10,
    # embedding_dim=512, batch=2, seq_len=8.
    vocab_len, embedding_dim = 10, 512
    B, N = 2, 8

    key = jax.random.PRNGKey(0)
    k_table, k_ids = jax.random.split(key)
    table = jax.random.normal(k_table, (vocab_len, embedding_dim), jnp.float32)
    x = jax.random.randint(k_ids, (B, N), 0, vocab_len, jnp.int32)
    ref = table[x]                               # nn.Embedding semantics

    # 1) Default path at this size: VMEM-resident table gather.
    out = jax.block_until_ready(input_embedding(x, table))
    assert out.shape == (B, N, embedding_dim)
    assert jnp.allclose(out, ref), "VMEM-path mismatch vs reference gather"

    # 2) Large-table path (per-row HBM DMA gather + single tile-level wait),
    #    forced so it is validated at this size too.
    out_hbm = jax.block_until_ready(input_embedding(x, table, force_hbm_gather=True))
    assert jnp.allclose(out_hbm, ref), "HBM-path mismatch vs reference gather"

    # 3) bf16 table exercises the uint32 packed-row view.
    table_bf16 = table.astype(jnp.bfloat16)
    out_bf16 = jax.block_until_ready(input_embedding(x, table_bf16))
    assert jnp.array_equal(out_bf16, table_bf16[x]), "bf16 packed-view mismatch"

    print("KERNEL_OK")
</pallas_src>

<mosaic_0001>
module attributes {stable_mosaic.version = 11 : i64} {
  func.func @_vmem_gather_kernel(%arg0: i32, %arg1: memref<16xi32, #tpu.memory_space<smem>>, %arg2: memref<10x512xf32, #tpu.memory_space<vmem>>, %arg3: memref<8x512xf32, #tpu.memory_space<vmem>>) attributes {dimension_semantics = [#tpu.dimension_semantics<parallel>], iteration_bounds = array<i64: 2>, scalar_prefetch = 1 : i64, scratch_operands = 0 : i64, tpu.core_type = #tpu.core_type<tc>, window_params = [{pipeline_mode = #tpu.pipeline_mode<synchronous>, transform_indices = @transform_0, window_bounds = array<i64: 10, 512>}, {transform_indices = @transform_1, window_bounds = array<i64: 8, 512>}]} {
    %c8_i32 = arith.constant 8 : i32
    %0 = arith.muli %arg0, %c8_i32 : i32
    %c0_i32 = arith.constant 0 : i32
    %1 = arith.addi %0, %c0_i32 : i32
    %2 = arith.index_cast %1 : i32 to index
    %3 = memref.load %arg1[%2] : memref<16xi32, #tpu.memory_space<smem>>
    %c0_i32_0 = arith.constant 0 : i32
    %4 = arith.maxsi %3, %c0_i32_0 : i32
    %c9_i32 = arith.constant 9 : i32
    %5 = arith.minsi %4, %c9_i32 : i32
    %6 = arith.index_cast %5 : i32 to index
    %c0 = arith.constant 0 : index
    %7 = vector.load %arg2[%6, %c0] : memref<10x512xf32, #tpu.memory_space<vmem>>, vector<1x512xf32>
    %c0_1 = arith.constant 0 : index
    %c0_2 = arith.constant 0 : index
    %8 = vector.load %arg3[%c0_1, %c0_2] : memref<8x512xf32, #tpu.memory_space<vmem>>, vector<1x512xf32>
    tpu.vector_store %arg3[%c0_1, %c0_2], %7 {strides = array<i32>} : memref<8x512xf32, #tpu.memory_space<vmem>>, vector<1x512xf32>,
    %c1_i32 = arith.constant 1 : i32
    %9 = arith.addi %0, %c1_i32 : i32
    %10 = arith.index_cast %9 : i32 to index
    %11 = memref.load %arg1[%10] : memref<16xi32, #tpu.memory_space<smem>>
    %c0_i32_3 = arith.constant 0 : i32
    %12 = arith.maxsi %11, %c0_i32_3 : i32
    %c9_i32_4 = arith.constant 9 : i32
    %13 = arith.minsi %12, %c9_i32_4 : i32
    %14 = arith.index_cast %13 : i32 to index
    %c0_5 = arith.constant 0 : index
    %15 = vector.load %arg2[%14, %c0_5] : memref<10x512xf32, #tpu.memory_space<vmem>>, vector<1x512xf32>
    %c1 = arith.constant 1 : index
    %c0_6 = arith.constant 0 : index
    %16 = vector.load %arg3[%c1, %c0_6] : memref<8x512xf32, #tpu.memory_space<vmem>>, vector<1x512xf32>
    tpu.vector_store %arg3[%c1, %c0_6], %15 {strides = array<i32>} : memref<8x512xf32, #tpu.memory_space<vmem>>, vector<1x512xf32>,
    %c2_i32 = arith.constant 2 : i32
    %17 = arith.addi %0, %c2_i32 : i32
    %18 = arith.index_cast %17 : i32 to index
    %19 = memref.load %arg1[%18] : memref<16xi32, #tpu.memory_space<smem>>
    %c0_i32_7 = arith.constant 0 : i32
    %20 = arith.maxsi %19, %c0_i32_7 : i32
    %c9_i32_8 = arith.constant 9 : i32
    %21 = arith.minsi %20, %c9_i32_8 : i32
    %22 = arith.index_cast %21 : i32 to index
    %c0_9 = arith.constant 0 : index
    %23 = vector.load %arg2[%22, %c0_9] : memref<10x512xf32, #tpu.memory_space<vmem>>, vector<1x512xf32>
    %c2 = arith.constant 2 : index
    %c0_10 = arith.constant 0 : index
    %24 = vector.load %arg3[%c2, %c0_10] : memref<8x512xf32, #tpu.memory_space<vmem>>, vector<1x512xf32>
    tpu.vector_store %arg3[%c2, %c0_10], %23 {strides = array<i32>} : memref<8x512xf32, #tpu.memory_space<vmem>>, vector<1x512xf32>,
    %c3_i32 = arith.constant 3 : i32
    %25 = arith.addi %0, %c3_i32 : i32
    %26 = arith.index_cast %25 : i32 to index
    %27 = memref.load %arg1[%26] : memref<16xi32, #tpu.memory_space<smem>>
    %c0_i32_11 = arith.constant 0 : i32
    %28 = arith.maxsi %27, %c0_i32_11 : i32
    %c9_i32_12 = arith.constant 9 : i32
    %29 = arith.minsi %28, %c9_i32_12 : i32
    %30 = arith.index_cast %29 : i32 to index
    %c0_13 = arith.constant 0 : index
    %31 = vector.load %arg2[%30, %c0_13] : memref<10x512xf32, #tpu.memory_space<vmem>>, vector<1x512xf32>
    %c3 = arith.constant 3 : index
    %c0_14 = arith.constant 0 : index
    %32 = vector.load %arg3[%c3, %c0_14] : memref<8x512xf32, #tpu.memory_space<vmem>>, vector<1x512xf32>
    tpu.vector_store %arg3[%c3, %c0_14], %31 {strides = array<i32>} : memref<8x512xf32, #tpu.memory_space<vmem>>, vector<1x512xf32>,
    %c4_i32 = arith.constant 4 : i32
    %33 = arith.addi %0, %c4_i32 : i32
    %34 = arith.index_cast %33 : i32 to index
    %35 = memref.load %arg1[%34] : memref<16xi32, #tpu.memory_space<smem>>
    %c0_i32_15 = arith.constant 0 : i32
    %36 = arith.maxsi %35, %c0_i32_15 : i32
    %c9_i32_16 = arith.constant 9 : i32
    %37 = arith.minsi %36, %c9_i32_16 : i32
    %38 = arith.index_cast %37 : i32 to index
    %c0_17 = arith.constant 0 : index
    %39 = vector.load %arg2[%38, %c0_17] : memref<10x512xf32, #tpu.memory_space<vmem>>, vector<1x512xf32>
    %c4 = arith.constant 4 : index
    %c0_18 = arith.constant 0 : index
    %40 = vector.load %arg3[%c4, %c0_18] : memref<8x512xf32, #tpu.memory_space<vmem>>, vector<1x512xf32>
    tpu.vector_store %arg3[%c4, %c0_18], %39 {strides = array<i32>} : memref<8x512xf32, #tpu.memory_space<vmem>>, vector<1x512xf32>,
    %c5_i32 = arith.constant 5 : i32
    %41 = arith.addi %0, %c5_i32 : i32
    %42 = arith.index_cast %41 : i32 to index
    %43 = memref.load %arg1[%42] : memref<16xi32, #tpu.memory_space<smem>>
    %c0_i32_19 = arith.constant 0 : i32
    %44 = arith.maxsi %43, %c0_i32_19 : i32
    %c9_i32_20 = arith.constant 9 : i32
    %45 = arith.minsi %44, %c9_i32_20 : i32
    %46 = arith.index_cast %45 : i32 to index
    %c0_21 = arith.constant 0 : index
    %47 = vector.load %arg2[%46, %c0_21] : memref<10x512xf32, #tpu.memory_space<vmem>>, vector<1x512xf32>
    %c5 = arith.constant 5 : index
    %c0_22 = arith.constant 0 : index
    %48 = vector.load %arg3[%c5, %c0_22] : memref<8x512xf32, #tpu.memory_space<vmem>>, vector<1x512xf32>
    tpu.vector_store %arg3[%c5, %c0_22], %47 {strides = array<i32>} : memref<8x512xf32, #tpu.memory_space<vmem>>, vector<1x512xf32>,
    %c6_i32 = arith.constant 6 : i32
    %49 = arith.addi %0, %c6_i32 : i32
    %50 = arith.index_cast %49 : i32 to index
    %51 = memref.load %arg1[%50] : memref<16xi32, #tpu.memory_space<smem>>
    %c0_i32_23 = arith.constant 0 : i32
    %52 = arith.maxsi %51, %c0_i32_23 : i32
    %c9_i32_24 = arith.constant 9 : i32
    %53 = arith.minsi %52, %c9_i32_24 : i32
    %54 = arith.index_cast %53 : i32 to index
    %c0_25 = arith.constant 0 : index
    %55 = vector.load %arg2[%54, %c0_25] : memref<10x512xf32, #tpu.memory_space<vmem>>, vector<1x512xf32>
    %c6 = arith.constant 6 : index
    %c0_26 = arith.constant 0 : index
    %56 = vector.load %arg3[%c6, %c0_26] : memref<8x512xf32, #tpu.memory_space<vmem>>, vector<1x512xf32>
    tpu.vector_store %arg3[%c6, %c0_26], %55 {strides = array<i32>} : memref<8x512xf32, #tpu.memory_space<vmem>>, vector<1x512xf32>,
    %c7_i32 = arith.constant 7 : i32
    %57 = arith.addi %0, %c7_i32 : i32
    %58 = arith.index_cast %57 : i32 to index
    %59 = memref.load %arg1[%58] : memref<16xi32, #tpu.memory_space<smem>>
    %c0_i32_27 = arith.constant 0 : i32
    %60 = arith.maxsi %59, %c0_i32_27 : i32
    %c9_i32_28 = arith.constant 9 : i32
    %61 = arith.minsi %60, %c9_i32_28 : i32
    %62 = arith.index_cast %61 : i32 to index
    %c0_29 = arith.constant 0 : index
    %63 = vector.load %arg2[%62, %c0_29] : memref<10x512xf32, #tpu.memory_space<vmem>>, vector<1x512xf32>
    %c7 = arith.constant 7 : index
    %c0_30 = arith.constant 0 : index
    %64 = vector.load %arg3[%c7, %c0_30] : memref<8x512xf32, #tpu.memory_space<vmem>>, vector<1x512xf32>
    tpu.vector_store %arg3[%c7, %c0_30], %63 {strides = array<i32>} : memref<8x512xf32, #tpu.memory_space<vmem>>, vector<1x512xf32>,
    return
  }
  func.func @transform_0(%arg0: i32, %arg1: memref<16xi32, #tpu.memory_space<smem>>) -> (i32, i32) {
    %c0_i32 = arith.constant 0 : i32
    %c0_i32_0 = arith.constant 0 : i32
    %c0_i32_1 = arith.constant 0 : i32
    return %c0_i32, %c0_i32_0 : i32, i32
  }
  func.func @transform_1(%arg0: i32, %arg1: memref<16xi32, #tpu.memory_space<smem>>) -> (i32, i32) {
    %c0_i32 = arith.constant 0 : i32
    %c0_i32_0 = arith.constant 0 : i32
    return %arg0, %c0_i32 : i32, i32
  }
}

</mosaic_0001>

<bundles_post_ra>
// kernel: tpu_custom_call.1
= control target key start
LH: loop header
LB: loop body
LE: loop exit
PB: predicated region body
PF: predicated region fallthrough
CT: control target
= control target key end

     0   :  { %s633_s12 = smov [#allocation3]   ;;  %s831_s0 = inlined_call_operand.hbm [shape: s32[16], index: 0, kind: input, shape index: {}]   ;;  %s832_s1 = inlined_call_operand.hbm [shape: f32[10,512], index: 1, kind: input, shape index: {}]   ;;  %s833_s2 = inlined_call_operand.hbm [shape: f32[16,512], index: 2, kind: output, shape index: {}]  }
   0x1   :  { %s8_s11 = sshll.u32 %s831_s0, 4  ;;  %s9_s11 = int_to_ptr.hbm [resolvable:$true] %s8_s11 }
   0x2   :  { %11 = dma.hbm_to_smem %s9_s11, 16, %s633_s12, [#allocation2] }
   0x3   :  { %607 = dma.done.wait [#allocation2], 16 }
   0x4   :  { %608 = vsyncadd [#allocation2], 4294967280 }
   0x5   :  { %14 = sfence }
   0x6   :  { %15 = vsyncpa [#allocation5], 0 }
   0x7   :  { %16 = vsyncpa [#allocation6], 0 }
   0x8   :  { %18 = vsyncpa [#allocation6 + $0x1], 0  ;;  %s655_s13 = smov 0   ;;  %s657_s14 = smov 0  }
   0x9   :  { %s659_s15 = smov 0   ;;  %s661_s16 = smov 0  }
   0xa LB: > { %s676_s0 = sadd.s32 4294967295, %s631_s16   ;;  %s368_s17 = sadd.s32 4294967294, %s631_s16   ;;  %s631_s16 = sphi %s661_s16, %s841_s16   ;;  %s627_s15 = sphi %s659_s15, %s840_s15   ;;  %s623_s14 = sphi %s657_s14, %s839_s14   ;;  %s619_s13 = sphi %s655_s13, %s838_s13  }
   0xb   : > { %s680_s18 = sadd.s32 1, %s631_s16   ;;  %s52_s19 = sadd.s32 1, %s627_s15 }
   0xc   : > { %s49_s20 = ssub.s32 %s631_s16, %s680_s18  ;;  %p62_p0 = scmp.ne.s32.totalorder %s627_s15, %s623_s14 }
   0xd   : > { %p50_p1 = scmp.eq.s32.totalorder %s49_s20, 0  ;;  %p63_p2 = scmp.eq.s32.totalorder %s676_s0, 1 }
   0xe   : > { %p68_p3 = scmp.ne.s32.totalorder %s623_s14, %s619_s13  ;;  %p69_p4 = scmp.eq.s32.totalorder %s368_s17, 1 }
   0xf   : > { %s691_s21 = scalar_select %p50_p1, %s627_s15, %s52_s19  }
  0x10   : > { %p693_p5 = por %p63_p2, %p62_p0  ;;  %p697_p6 = por %p69_p4, %p68_p3 }
  0x11   : > { %p369_p7 = scmp.ge.s32.totalorder %s631_s16, 1  ;;  %p76_p8 = scmp.lt.s32.totalorder %s631_s16, 3 }
  0x12   : > { %p482_p9 = scmp.eq.s32.totalorder %s676_s0, 0  ;;  %s87_s26 = sshll.u32 %s832_s1, 4  ;;  %s88_s26 = int_to_ptr.hbm [resolvable:$true] %s87_s26 }
  0x13   : > { %p77_p10 = pnand %p369_p7, %p76_p8  ;;  %s634_s27 = smov [#allocation4]  }
  0x14   : > { %s89_s28 = sshll.u32 %s634_s27, 4  ;;  %s635_s29 = smov 512   ;;  %s90_s28 = int_to_ptr.vmem [resolvable:$true] %s89_s28 }
  0x15   : > { %p474_p11 = pneg %p77_p10  ;;  %s636_s30 = smov 32  }
  0x16   : > { %105 = sbr.rel (%p77_p10) target bundleno = 91 (0x5b), region = 24 }
  0x17   : > { %p475_p12 = pnand %p482_p9, %p474_p11 }
  0x19   : > { %477 = dma.hbm_to_vmem [thread:$0]  (!%p475_p12), %s88_s26, 1024, %s90_s28, [#allocation5], %s635_s29, %s635_s29, %s636_s30  }
  0x1b   : > { %610 = dma.done.wait (%p482_p9), [#allocation5], 1024  }
  0x1c   : > { %612 = vsyncadd (%p482_p9), [#allocation5], 4294966272  ;;  %s118_s3 = sand.u32 1, %s623_s14   ;;  %s715_s4 = sshll.u32 %s676_s0, 3  ;;  %v136_v0 = vlaneseq }
  0x1d   : > { %s122_s5 = sld [smem:[#allocation3 + %s715_s4]]  ;;  %s373_s6 = sshll.u32 %s118_s3, 5 }
  0x1e   : > { %s142_s7 = sadd.s32 1, %s715_s4  ;;  %s160_s8 = sadd.s32 2, %s715_s4  ;;  %vm732_vm0 = vcmp.lt.s32.totalorder %v136_v0, 512 }
  0x1f   : > { %s143_s9 = sld [smem:[#allocation3 + %s142_s7]]  ;;  %s178_s10 = sadd.s32 3, %s715_s4 }
  0x20   : > { %s723_s11 = sld [smem:[#allocation3 + %s160_s8]]  ;;  %s196_s12 = sadd.s32 4, %s715_s4 }
  0x21   : > { %s726_s17 = sld [smem:[#allocation3 + %s178_s10]]  ;;  %s214_s20 = sadd.s32 5, %s715_s4 }
  0x22   : > { %s728_s19 = sld [smem:[#allocation3 + %s196_s12]]  ;;  %s232_s29 = sadd.s32 6, %s715_s4 }
  0x23   : > { %p123_p13 = scmp.gt.s32.totalorder %s122_s5, 0  ;;  %p375_p0 = scmp.lt.s32.totalorder %s122_s5, 9 }
  0x24   : > { %s739_s7 = scalar_lea.vmem [#allocation7], %s373_s6 }
  0x25   : > { %s843_s5 = smov (!%p123_p13, %s122_s5), 0  ;;  %p144_p1 = scmp.gt.s32.totalorder %s143_s9, 0 }
  0x26   : > { %p382_p2 = scmp.lt.s32.totalorder %s143_s9, 9  ;;  %s845_s5 = smov (!%p375_p0, %s843_s5), 9 }
  0x27   : > { %s145_s24 = scalar_select %p144_p1, %s143_s9, 0 }
  0x28   : > { %s127_s25 = sshra.s32 %s845_s5, 3  ;;  %s130_s26 = sand.u32 7, %s845_s5 }
  0x29   : > { %s445_s27 = sshll.u32 %s127_s25, 5  ;;  %p162_p3 = scmp.gt.s32.totalorder %s723_s11, 0 }
  0x2a   : > { %s133_s28 = sadd.s32 %s445_s27, %s130_s26  ;;  %p390_p4 = scmp.lt.s32.totalorder %s723_s11, 9 }
  0x2b   : > { %s134_s30 = scalar_lea.vmem [#allocation4], %s133_s28  ;;  %s847_s24 = smov (!%p382_p2, %s145_s24), 9 }
  0x2c   : > { %v135_v2 = vld [vmem:[%s134_s30] ss:$8 sm:$0xf]  ;;  %s163_s5 = scalar_select %p162_p3, %s723_s11, 0 }
  0x2d   : > { %140 = vst.msk [vmem:[%s739_s7] ss:$8 sm:$0xf] %vm732_vm0, %v135_v2  ;;  %s148_s8 = sshra.s32 %s847_s24, 3  ;;  %s151_s10 = sand.u32 7, %s847_s24 }
  0x2e   : > { %s448_s12 = sshll.u32 %s148_s8, 5  ;;  %p180_p7 = scmp.gt.s32.totalorder %s726_s17, 0 }
  0x2f   : > { %s154_s25 = sadd.s32 %s448_s12, %s151_s10  ;;  %p398_p8 = scmp.lt.s32.totalorder %s726_s17, 9 }
  0x30   : > { %p198_p9 = scmp.gt.s32.totalorder %s728_s19, 0  ;;  %s155_s9 = scalar_lea.vmem [#allocation4], %s154_s25 }
  0x31   : > { %v156_v3 = vld [vmem:[%s155_s9] ss:$8 sm:$0xf]  ;;  %s849_s5 = smov (!%p390_p4, %s163_s5), 9  ;;  %s756_s28 = sld [smem:[#allocation3 + %s214_s20]] }
  0x32   : > { %389 = vst.msk [vmem:[%s739_s7 + $0x1] ss:$8 sm:$0xf] %vm732_vm0, %v156_v3  ;;  %s181_s6 = scalar_select %p180_p7, %s726_s17, 0 }
  0x33   : > { %s166_s26 = sshra.s32 %s849_s5, 3  ;;  %s169_s24 = sand.u32 7, %s849_s5 }
  0x34   : > { %s451_s27 = sshll.u32 %s166_s26, 5  ;;  %p406_p10 = scmp.lt.s32.totalorder %s728_s19, 9 }
  0x35   : > { %s172_s30 = sadd.s32 %s451_s27, %s169_s24  ;;  %s759_s8 = sld [smem:[#allocation3 + %s232_s29]] }
  0x36   : > { %s173_s11 = scalar_lea.vmem [#allocation4], %s172_s30  ;;  %s851_s6 = smov (!%p398_p8, %s181_s6), 9 }
  0x37   : > { %v174_v4 = vld [vmem:[%s173_s11] ss:$8 sm:$0xf]  ;;  %s199_s5 = scalar_select %p198_p9, %s728_s19, 0 }
  0x38   : > { %397 = vst.msk [vmem:[%s739_s7 + $0x2] ss:$8 sm:$0xf] %vm732_vm0, %v174_v4  ;;  %s184_s20 = sshra.s32 %s851_s6, 3  ;;  %s187_s10 = sand.u32 7, %s851_s6 }
  0x39   : > { %s454_s12 = sshll.u32 %s184_s20, 5  ;;  %p216_p11 = scmp.gt.s32.totalorder %s756_s28, 0 }
  0x3a   : > { %s190_s25 = sadd.s32 %s454_s12, %s187_s10  ;;  %s250_s29 = sadd.s32 7, %s715_s4 }
  0x3b   : > { %p414_p12 = scmp.lt.s32.totalorder %s756_s28, 9  ;;  %s191_s9 = scalar_lea.vmem [#allocation4], %s190_s25 }
  0x3c   : > { %v192_v5 = vld [vmem:[%s191_s9] ss:$8 sm:$0xf]  ;;  %s853_s5 = smov (!%p406_p10, %s199_s5), 9  ;;  %p234_p13 = scmp.gt.s32.totalorder %s759_s8, 0 }
  0x3d   : > { %405 = vst.msk [vmem:[%s739_s7 + $0x3] ss:$8 sm:$0xf] %vm732_vm0, %v192_v5  ;;  %s217_s17 = scalar_select %p216_p11, %s756_s28, 0 }
  0x3e   : > { %s202_s26 = sshra.s32 %s853_s5, 3  ;;  %s205_s6 = sand.u32 7, %s853_s5 }
  0x3f   : > { %s457_s24 = sshll.u32 %s202_s26, 5  ;;  %s251_s30 = sld [smem:[#allocation3 + %s250_s29]] }
  0x40   : > { %s208_s27 = sadd.s32 %s457_s24, %s205_s6  ;;  %p422_p0 = scmp.lt.s32.totalorder %s759_s8, 9 }
  0x41   : > { %s209_s4 = scalar_lea.vmem [#allocation4], %s208_s27  ;;  %s855_s17 = smov (!%p414_p12, %s217_s17), 9 }
  0x42   : > { %v210_v6 = vld [vmem:[%s209_s4] ss:$8 sm:$0xf]  ;;  %s235_s19 = scalar_select %p234_p13, %s759_s8, 0 }
  0x43   : > { %413 = vst.msk [vmem:[%s739_s7 + $0x4] ss:$8 sm:$0xf] %vm732_vm0, %v210_v6  ;;  %s220_s11 = sshra.s32 %s855_s17, 3  ;;  %s223_s20 = sand.u32 7, %s855_s17 }
  0x44   : > { %s460_s10 = sshll.u32 %s220_s11, 5  ;;  %s467_s12 = sshll.u32 %s676_s0, 5 }
  0x45   : > { %s226_s5 = sadd.s32 %s460_s10, %s223_s20  ;;  %p252_p1 = scmp.gt.s32.totalorder %s251_s30, 0 }
  0x46   : > { %p430_p2 = scmp.lt.s32.totalorder %s251_s30, 9  ;;  %s227_s25 = scalar_lea.vmem [#allocation4], %s226_s5 }
  0x47   : > { %v228_v7 = vld [vmem:[%s227_s25] ss:$8 sm:$0xf]  ;;  %s857_s19 = smov (!%p422_p0, %s235_s19), 9  ;;  %s859_s30 = smov (!%p252_p1, %s251_s30), 0 }
  0x48   : > { %421 = vst.msk [vmem:[%s739_s7 + $0x5] ss:$8 sm:$0xf] %vm732_vm0, %v228_v7  ;;  %s238_s28 = sshra.s32 %s857_s19, 3  ;;  %s241_s29 = sand.u32 7, %s857_s19 }
  0x49   : > { %s463_s9 = sshll.u32 %s238_s28, 5  ;;  %s280_s0 = scalar_lea.hbm %s833_s2, %s467_s12 }
  0x4a   : > { %s244_s26 = sadd.s32 %s463_s9, %s241_s29  ;;  %s861_s30 = smov (!%p430_p2, %s859_s30), 9 }
  0x4b   : > { %s245_s24 = scalar_lea.vmem [#allocation4], %s244_s26  ;;  %s282_s8 = sshll.u32 %s739_s7, 4  ;;  %s283_s8 = int_to_ptr.vmem [resolvable:$true] %s282_s8 }
  0x4c   : > { %v246_v8 = vld [vmem:[%s245_s24] ss:$8 sm:$0xf]  ;;  %s284_s27 = sshll.u32 %s280_s0, 4  ;;  %s256_s4 = sshra.s32 %s861_s30, 3  ;;  %s285_s27 = int_to_ptr.hbm [resolvable:$true] %s284_s27 }
  0x4d   : > { %429 = vst.msk [vmem:[%s739_s7 + $0x6] ss:$8 sm:$0xf] %vm732_vm0, %v246_v8  ;;  %s259_s11 = sand.u32 7, %s861_s30  ;;  %s466_s19 = sshll.u32 %s256_s4, 5 }
  0x4e   : > { %s262_s20 = sadd.s32 %s466_s19, %s259_s11  ;;  %s269_s12 = scalar_lea.sflag [#allocation6], %s118_s3 }
  0x4f   : > { %s263_s10 = scalar_lea.vmem [#allocation4], %s262_s20  ;;  %s577_s5 = sshra.s32 %s285_s27, 4  ;;  %s578_s5 = int_to_ptr.hbm [resolvable:$true] %s577_s5 }
  0x50   : > { %v264_v9 = vld [vmem:[%s263_s10] ss:$8 sm:$0xf]  ;;  %s579_s25 = scalar_lea.hbm %s578_s5, 32  ;;  %s583_s29 = scalar_lea.hbm %s833_s2, 64 }
  0x51   : > { %437 = vst.msk [vmem:[%s739_s7 + $0x7] ss:$8 sm:$0xf] %vm732_vm0, %v264_v9  ;;  %p580_p3 = scmp.ne.s32.totalorder %s578_s5, %s579_s25  ;;  %p584_p8 = scmp.lt.s32.totalorder %s578_s5, %s833_s2 }
  0x52   : > { %p585_p9 = scmp.lt.s32.totalorder %s583_s29, %s579_s25 }
  0x53   : > { %p581_p4 = pnand %p580_p3, %p693_p5 }
  0x54   : > { %p586_p10 = por %p585_p9, %p584_p8 }
  0x55   : > { %p582_p7 = pneg %p581_p4 }
  0x57   : > { %p587_p11 = pnand %p586_p10, %p582_p7 }
  0x59   : > { %590 = shalt.err (!%p587_p11)
}
  0x5a   : > { %472 = dma.vmem_to_hbm [thread:$0]  (%p693_p5), %s283_s8, 512, %s285_s27, %s269_s12  }
  0x5b PF: > { %p484_p12 = scmp.ge.s32.totalorder %s631_s16, 2  ;;  %s296_s3 = sand.u32 1, %s619_s13  }
  0x5c   : > { %s297_s7 = scalar_lea.sflag [#allocation6], %s296_s3 }
  0x5d   : > { %p479_p13 = pnand %p484_p12, %p697_p6 }
  0x5f   : > { %p480_p0 = pneg %p479_p13 }
  0x61   : > { %614 = dma.done.wait (%p480_p0), %s297_s7, 512  }
  0x62   : > { %616 = vsyncadd (%p480_p0), %s297_s7, 4294966784  ;;  %p21_p1 = scmp.ge.s32.totalorder %s680_s18, 4   ;;  %s838_s13 = smov %s623_s14 }
  0x63   : > { %s839_s14 = smov %s627_s15  ;;  %s840_s15 = smov %s691_s21 }
  0x64   : > { %s841_s16 = smov %s680_s18  ;;  %23 = sbr.rel (!%p21_p1) target bundleno = 10 (0xa), region = 76 }
  0x69   :  { %303 = vsyncpa [#allocation5], 1 }
  0x6a   :  { %305 = vsyncpa [#allocation5 + $0x1], 1 }
  0x6b   :  { %306 = vsyncpa [#allocation6], 1 }
  0x6c   :  { %308 = vsyncpa [#allocation6 + $0x1], 1 }

</bundles_post_ra>
